<compile_context>
chip_gen: v7x
topology: tpu7x:2x2x1
jax: 0.10.0
libtpu: 0.0.40
codegen_flags: <defaults>
</compile_context>

<pallas_src>
import jax
import jax.numpy as jnp
from jax import lax
from jax.experimental import pallas as pl
from jax.experimental.pallas import tpu as pltpu

# ---------------- problem sizes (small, consistent with the forward) ----------------
B, C, H, W = 2, 4, 16, 16          # image_features: (B, C, H, W)  NCHW
PATCH = 4
NP = (H // PATCH) * (W // PATCH)   # 16 image tokens per batch element
PDIM = C * PATCH * PATCH           # 64 features per patch
PDIM_PAD = 128                     # lane-dense padded patch features (+1 bias col)
D = 32                             # hidden size
S = 8                              # text sequence length
V = 64                             # vocab size
VPAD = 128                         # lane-dense padded vocab for the output store
DMLP = 4 * D                       # 128 MLP hidden

# column offsets inside the packed W_in (D, 384) slab
_C_QKV = 3 * D                     # [0:96)    -> wq*scale | wk | wv
_C_CQ = 4 * D                      # [96:128)  -> wcq*scale
_C_W1 = _C_CQ + DMLP               # [128:256) -> w1
_C_LM = _C_W1 + VPAD               # [256:384) -> wlm zero-padded to 128 cols


# ================================ fused kernel ======================================
def _layernorm(x):
    mu = jnp.mean(x, axis=-1, keepdims=True)
    var = jnp.mean((x - mu) ** 2, axis=-1, keepdims=True)
    return (x - mu) * lax.rsqrt(var + 1e-5)


def _softmax(scores):
    m = jnp.max(scores, axis=-1, keepdims=True)
    e = jnp.exp(scores - m)
    # divide -> EUP reciprocal (approx) + VALU multiply
    return e * pl.reciprocal(jnp.sum(e, axis=-1, keepdims=True), approx=True)


def _fused_kernel(patches_ref, wp_ref, x_ref, sbias_ref, cbias_ref,
                  win_ref, wimg_ref, wout_ref, logits_ref):
    # ---- vision encoder: patch embedding (bias folded into the matmul) ----
    img = jnp.dot(patches_ref[...], wp_ref[...],
                  preferred_element_type=jnp.float32)             # (B*Np, D)

    x = x_ref[...]                                                # (B*S, D)
    w_in = win_ref[...]                                           # (D, 384)
    w_out = wout_ref[...]                                         # (6D, D)

    # ---- masked self-attention (fused QKV, additive block-diag + pad bias) ----
    h = _layernorm(x)
    qkv = jnp.dot(h, w_in[:, 0:_C_QKV], preferred_element_type=jnp.float32)  # (B*S, 3D)
    q = qkv[:, 0:D]                      # scale already folded into wq
    k = qkv[:, D:2 * D]
    v = qkv[:, 2 * D:3 * D]
    scores = jnp.dot(q, k.T, preferred_element_type=jnp.float32) + sbias_ref[...]
    attn = jnp.dot(_softmax(scores), v, preferred_element_type=jnp.float32)
    x = x + jnp.dot(attn, w_out[0:D, :], preferred_element_type=jnp.float32)

    # ---- cross-attention to image embeddings (fused K/V projection) ----
    h = _layernorm(x)
    q = jnp.dot(h, w_in[:, _C_QKV:_C_CQ], preferred_element_type=jnp.float32)
    kv = jnp.dot(img, wimg_ref[...], preferred_element_type=jnp.float32)     # (B*Np, 2D)
    ki = kv[:, 0:D]
    vi = kv[:, D:2 * D]
    scores = jnp.dot(q, ki.T, preferred_element_type=jnp.float32) + cbias_ref[...]
    attn = jnp.dot(_softmax(scores), vi, preferred_element_type=jnp.float32)
    x = x + jnp.dot(attn, w_out[D:2 * D, :], preferred_element_type=jnp.float32)

    # ---- MLP ----
    h = _layernorm(x)
    hidden = jnp.maximum(
        jnp.dot(h, w_in[:, _C_CQ:_C_W1], preferred_element_type=jnp.float32), 0.0)
    x = x + jnp.dot(hidden, w_out[2 * D:6 * D, :], preferred_element_type=jnp.float32)

    # ---- LM head: lane-dense (B*S, 128) store; sliced to V outside the kernel ----
    logits_ref[...] = jnp.dot(_layernorm(x), w_in[:, _C_W1:_C_LM],
                              preferred_element_type=jnp.float32)


# ================================ wrapper ==========================================
def _pack_params(params):
    """Pack the 15 small parameter tensors into 4 lane-friendly slabs."""
    scale = jnp.float32(1.0) / jnp.sqrt(jnp.float32(D))
    wlm_pad = jnp.zeros((D, VPAD), jnp.float32).at[:, :V].set(params["wlm"])
    w_in = jnp.concatenate(
        [params["wq"] * scale, params["wk"], params["wv"],
         params["wcq"] * scale, params["w1"], wlm_pad], axis=1)            # (D, 384)
    w_img = jnp.concatenate([params["wck"], params["wcv"]], axis=1)        # (D, 2D)
    w_out = jnp.concatenate(
        [params["wo"], params["wco"], params["w2"]], axis=0)               # (6D, D)
    # patch weight padded to a 128-row slab; row PDIM carries the bias (matched by a
    # constant-1 column in the padded patches), rows PDIM+1.. are zero.
    wp_ext = jnp.zeros((PDIM_PAD, D), jnp.float32)
    wp_ext = wp_ext.at[:PDIM, :].set(params["wp"]).at[PDIM, :].set(params["bp"])
    return wp_ext, w_in, w_img, w_out


def vision_text_model(image_features, input_ids, atten_mask, params):
    """Mirrors VisionTextModel.forward with a single fused Pallas kernel."""
    b = image_features.shape[0]
    BS, BNP = b * S, b * NP

    # NCHW -> non-overlapping 4x4 patches -> (B*Np, C*P*P), lane-padded to 128 cols
    xi = image_features.reshape(b, C, H // PATCH, PATCH, W // PATCH, PATCH)
    patches = xi.transpose(0, 2, 4, 1, 3, 5).reshape(BNP, PDIM).astype(jnp.float32)
    patches_ext = jnp.zeros((BNP, PDIM_PAD), jnp.float32)
    patches_ext = patches_ext.at[:, :PDIM].set(patches).at[:, PDIM].set(1.0)

    # token + positional embeddings, batch flattened into rows: (B*S, D)
    tok = jnp.take(params["tok_emb"], input_ids, axis=0)
    x_txt = (tok + params["pos_emb"][None, :, :]).astype(jnp.float32).reshape(BS, D)

    # additive attention biases: block-diagonal across batch + key-side padding
    neg = jnp.float32(-1e9)
    same_self = jnp.kron(jnp.eye(b, dtype=jnp.float32),
                         jnp.ones((S, S), jnp.float32))                    # (B*S, B*S)
    key_keep = atten_mask.astype(jnp.float32).reshape(1, BS)               # 1 = attend
    self_bias = (1.0 - same_self * key_keep) * neg                         # (B*S, B*S)
    same_cross = jnp.kron(jnp.eye(b, dtype=jnp.float32),
                          jnp.ones((S, NP), jnp.float32))                  # (B*S, B*Np)
    cross_bias = (1.0 - same_cross) * neg

    wp_ext, w_in, w_img, w_out = _pack_params(params)

    logits_pad = pl.pallas_call(
        _fused_kernel,
        out_shape=jax.ShapeDtypeStruct((BS, VPAD), jnp.float32),
        grid=(1,),
        in_specs=[
            pl.BlockSpec((BNP, PDIM_PAD), lambda i: (0, 0)),    # padded patches
            pl.BlockSpec((PDIM_PAD, D), lambda i: (0, 0)),      # wp + bias row
            pl.BlockSpec((BS, D), lambda i: (0, 0)),            # text embeds
            pl.BlockSpec((BS, BS), lambda i: (0, 0)),           # self-attn bias
            pl.BlockSpec((BS, BNP), lambda i: (0, 0)),          # cross-attn bias
            pl.BlockSpec((D, _C_LM), lambda i: (0, 0)),         # packed W_in (32,384)
            pl.BlockSpec((D, 2 * D), lambda i: (0, 0)),         # packed W_img
            pl.BlockSpec((6 * D, D), lambda i: (0, 0)),         # packed W_out
        ],
        out_specs=pl.BlockSpec((BS, VPAD), lambda i: (0, 0)),
        compiler_params=pltpu.CompilerParams(dimension_semantics=("arbitrary",)),
    )(patches_ext, wp_ext, x_txt, self_bias, cross_bias, w_in, w_img, w_out)

    # strip vocab padding, restore (B, S, V)
    return logits_pad[:, :V].reshape(b, S, V)


# ================================ parameters =======================================
def init_params(key):
    keys = jax.random.split(key, 16)

    def w(k, shape, scale=0.05):
        return (scale * jax.random.normal(k, shape)).astype(jnp.float32)

    return {
        # vision encoder (patch embedding)
        "wp": w(keys[0], (PDIM, D)),
        "bp": w(keys[1], (D,)),
        # text embeddings
        "tok_emb": w(keys[2], (V, D)),
        "pos_emb": w(keys[3], (S, D)),
        # self-attention
        "wq": w(keys[4], (D, D)), "wk": w(keys[5], (D, D)),
        "wv": w(keys[6], (D, D)), "wo": w(keys[7], (D, D)),
        # cross-attention
        "wcq": w(keys[8], (D, D)), "wck": w(keys[9], (D, D)),
        "wcv": w(keys[10], (D, D)), "wco": w(keys[11], (D, D)),
        # MLP
        "w1": w(keys[12], (D, 4 * D)), "w2": w(keys[13], (4 * D, D)),
        # LM head
        "wlm": w(keys[14], (D, V)),
    }


if __name__ == "__main__":
    root = jax.random.PRNGKey(0)
    k_img, k_ids, k_par = jax.random.split(root, 3)

    image_features = jax.random.normal(k_img, (B, C, H, W), dtype=jnp.float32)
    input_ids = jax.random.randint(k_ids, (B, S), 0, V, dtype=jnp.int32)
    atten_mask = jnp.ones((B, S), dtype=jnp.float32).at[:, -2:].set(0.0)  # last 2 = pad

    params = init_params(k_par)

    logits = vision_text_model(image_features, input_ids, atten_mask, params)
    jax.block_until_ready(logits)

    assert logits.shape == (B, S, V) and logits.dtype == jnp.float32
    assert bool(jnp.all(jnp.isfinite(logits)))
    print("KERNEL_OK")
</pallas_src>

<mosaic_0001>
module attributes {stable_mosaic.version = 11 : i64} {
  func.func @_fused_kernel(%arg0: i32, %arg1: memref<32x128xf32, #tpu.memory_space<vmem>>, %arg2: memref<128x32xf32, #tpu.memory_space<vmem>>, %arg3: memref<16x32xf32, #tpu.memory_space<vmem>>, %arg4: memref<16x16xf32, #tpu.memory_space<vmem>>, %arg5: memref<16x32xf32, #tpu.memory_space<vmem>>, %arg6: memref<32x384xf32, #tpu.memory_space<vmem>>, %arg7: memref<32x64xf32, #tpu.memory_space<vmem>>, %arg8: memref<192x32xf32, #tpu.memory_space<vmem>>, %arg9: memref<16x128xf32, #tpu.memory_space<vmem>>) attributes {dimension_semantics = [#tpu.dimension_semantics<arbitrary>], iteration_bounds = array<i64: 1>, scalar_prefetch = 0 : i64, scratch_operands = 0 : i64, tpu.core_type = #tpu.core_type<tc>, window_params = [{pipeline_mode = #tpu.pipeline_mode<synchronous>, transform_indices = @transform_0, window_bounds = array<i64: 32, 128>}, {pipeline_mode = #tpu.pipeline_mode<synchronous>, transform_indices = @transform_1, window_bounds = array<i64: 128, 32>}, {pipeline_mode = #tpu.pipeline_mode<synchronous>, transform_indices = @transform_2, window_bounds = array<i64: 16, 32>}, {pipeline_mode = #tpu.pipeline_mode<synchronous>, transform_indices = @transform_3, window_bounds = array<i64: 16, 16>}, {pipeline_mode = #tpu.pipeline_mode<synchronous>, transform_indices = @transform_4, window_bounds = array<i64: 16, 32>}, {pipeline_mode = #tpu.pipeline_mode<synchronous>, transform_indices = @transform_5, window_bounds = array<i64: 32, 384>}, {pipeline_mode = #tpu.pipeline_mode<synchronous>, transform_indices = @transform_6, window_bounds = array<i64: 32, 64>}, {pipeline_mode = #tpu.pipeline_mode<synchronous>, transform_indices = @transform_7, window_bounds = array<i64: 192, 32>}, {pipeline_mode = #tpu.pipeline_mode<synchronous>, transform_indices = @transform_8, window_bounds = array<i64: 16, 128>}]} {
    %c0 = arith.constant 0 : index
    %c0_0 = arith.constant 0 : index
    %0 = vector.load %arg1[%c0, %c0_0] : memref<32x128xf32, #tpu.memory_space<vmem>>, vector<32x128xf32>
    %c0_1 = arith.constant 0 : index
    %c0_2 = arith.constant 0 : index
    %1 = vector.load %arg2[%c0_1, %c0_2] : memref<128x32xf32, #tpu.memory_space<vmem>>, vector<128x32xf32>
    %cst = arith.constant dense<0.000000e+00> : vector<32x32xf32>
    %2 = tpu.matmul %0, %1, %cst {dimension_numbers = #tpu.dot_dimension_numbers<[1], [0], [0], [1], [0, 0, 1, 1], [], []>} : vector<32x128xf32>, vector<128x32xf32>, vector<32x32xf32> -> vector<32x32xf32>
    %c0_3 = arith.constant 0 : index
    %c0_4 = arith.constant 0 : index
    %3 = vector.load %arg3[%c0_3, %c0_4] : memref<16x32xf32, #tpu.memory_space<vmem>>, vector<16x32xf32>
    %c0_5 = arith.constant 0 : index
    %c0_6 = arith.constant 0 : index
    %4 = vector.load %arg6[%c0_5, %c0_6] : memref<32x384xf32, #tpu.memory_space<vmem>>, vector<32x384xf32>
    %c0_7 = arith.constant 0 : index
    %c0_8 = arith.constant 0 : index
    %5 = vector.load %arg8[%c0_7, %c0_8] : memref<192x32xf32, #tpu.memory_space<vmem>>, vector<192x32xf32>
    %cst_9 = arith.constant dense<0.000000e+00> : vector<16xf32>
    %6 = vector.multi_reduction <add>, %3, %cst_9 [1] : vector<16x32xf32> to vector<16xf32>
    %7 = vector.shape_cast %6 : vector<16xf32> to vector<16x1xf32>
    %cst_10 = arith.constant 3.200000e+01 : f32
    %8 = vector.broadcast %cst_10 : f32 to vector<16x1xf32>
    %9 = arith.divf %7, %8 : vector<16x1xf32>
    %10 = vector.broadcast %9 : vector<16x1xf32> to vector<16x32xf32>
    %11 = arith.subf %3, %10 : vector<16x32xf32>
    %12 = arith.mulf %11, %11 : vector<16x32xf32>
    %cst_11 = arith.constant dense<0.000000e+00> : vector<16xf32>
    %13 = vector.multi_reduction <add>, %12, %cst_11 [1] : vector<16x32xf32> to vector<16xf32>
    %14 = vector.shape_cast %13 : vector<16xf32> to vector<16x1xf32>
    %cst_12 = arith.constant 3.200000e+01 : f32
    %15 = vector.broadcast %cst_12 : f32 to vector<16x1xf32>
    %16 = arith.divf %14, %15 : vector<16x1xf32>
    %17 = vector.broadcast %9 : vector<16x1xf32> to vector<16x32xf32>
    %18 = arith.subf %3, %17 : vector<16x32xf32>
    %cst_13 = arith.constant 9.99999974E-6 : f32
    %19 = vector.broadcast %cst_13 : f32 to vector<16x1xf32>
    %20 = arith.addf %16, %19 : vector<16x1xf32>
    %21 = math.rsqrt %20 : vector<16x1xf32>
    %22 = vector.broadcast %21 : vector<16x1xf32> to vector<16x32xf32>
    %23 = arith.mulf %18, %22 : vector<16x32xf32>
    %24 = vector.extract_strided_slice %4 {offsets = [0, 0], sizes = [32, 96], strides = [1, 1]} : vector<32x384xf32> to vector<32x96xf32>
    %cst_14 = arith.constant dense<0.000000e+00> : vector<16x96xf32>
    %25 = tpu.matmul %23, %24, %cst_14 {dimension_numbers = #tpu.dot_dimension_numbers<[1], [0], [0], [1], [0, 0, 1, 1], [], []>} : vector<16x32xf32>, vector<32x96xf32>, vector<16x96xf32> -> vector<16x96xf32>
    %26 = vector.extract_strided_slice %25 {offsets = [0, 0], sizes = [16, 32], strides = [1, 1]} : vector<16x96xf32> to vector<16x32xf32>
    %27 = vector.extract_strided_slice %25 {offsets = [0, 32], sizes = [16, 32], strides = [1, 1]} : vector<16x96xf32> to vector<16x32xf32>
    %28 = vector.extract_strided_slice %25 {offsets = [0, 64], sizes = [16, 32], strides = [1, 1]} : vector<16x96xf32> to vector<16x32xf32>
    %29 = tpu.transpose %27, [1, 0] : vector<16x32xf32> -> vector<32x16xf32>
    %cst_15 = arith.constant dense<0.000000e+00> : vector<16x16xf32>
    %30 = tpu.matmul %26, %29, %cst_15 {dimension_numbers = #tpu.dot_dimension_numbers<[1], [0], [0], [1], [0, 0, 1, 1], [], []>} : vector<16x32xf32>, vector<32x16xf32>, vector<16x16xf32> -> vector<16x16xf32>
    %c0_16 = arith.constant 0 : index
    %c0_17 = arith.constant 0 : index
    %31 = vector.load %arg4[%c0_16, %c0_17] : memref<16x16xf32, #tpu.memory_space<vmem>>, vector<16x16xf32>
    %32 = arith.addf %30, %31 : vector<16x16xf32>
    %cst_18 = arith.constant dense<0xFF800000> : vector<16xf32>
    %33 = vector.multi_reduction <maximumf>, %32, %cst_18 [1] : vector<16x16xf32> to vector<16xf32>
    %34 = vector.shape_cast %33 : vector<16xf32> to vector<16x1xf32>
    %35 = vector.broadcast %34 : vector<16x1xf32> to vector<16x16xf32>
    %36 = arith.subf %32, %35 : vector<16x16xf32>
    %37 = math.exp %36 : vector<16x16xf32>
    %cst_19 = arith.constant dense<0.000000e+00> : vector<16xf32>
    %38 = vector.multi_reduction <add>, %37, %cst_19 [1] : vector<16x16xf32> to vector<16xf32>
    %39 = vector.shape_cast %38 : vector<16xf32> to vector<16x1xf32>
    %40 = tpu.reciprocal %39 {approx = true} : vector<16x1xf32> -> vector<16x1xf32>
    %41 = vector.broadcast %40 : vector<16x1xf32> to vector<16x16xf32>
    %42 = arith.mulf %37, %41 : vector<16x16xf32>
    %cst_20 = arith.constant dense<0.000000e+00> : vector<16x32xf32>
    %43 = tpu.matmul %42, %28, %cst_20 {dimension_numbers = #tpu.dot_dimension_numbers<[1], [0], [0], [1], [0, 0, 1, 1], [], []>} : vector<16x16xf32>, vector<16x32xf32>, vector<16x32xf32> -> vector<16x32xf32>
    %44 = vector.extract_strided_slice %5 {offsets = [0, 0], sizes = [32, 32], strides = [1, 1]} : vector<192x32xf32> to vector<32x32xf32>
    %cst_21 = arith.constant dense<0.000000e+00> : vector<16x32xf32>
    %45 = tpu.matmul %43, %44, %cst_21 {dimension_numbers = #tpu.dot_dimension_numbers<[1], [0], [0], [1], [0, 0, 1, 1], [], []>} : vector<16x32xf32>, vector<32x32xf32>, vector<16x32xf32> -> vector<16x32xf32>
    %46 = arith.addf %3, %45 : vector<16x32xf32>
    %cst_22 = arith.constant dense<0.000000e+00> : vector<16xf32>
    %47 = vector.multi_reduction <add>, %46, %cst_22 [1] : vector<16x32xf32> to vector<16xf32>
    %48 = vector.shape_cast %47 : vector<16xf32> to vector<16x1xf32>
    %cst_23 = arith.constant 3.200000e+01 : f32
    %49 = vector.broadcast %cst_23 : f32 to vector<16x1xf32>
    %50 = arith.divf %48, %49 : vector<16x1xf32>
    %51 = vector.broadcast %50 : vector<16x1xf32> to vector<16x32xf32>
    %52 = arith.subf %46, %51 : vector<16x32xf32>
    %53 = arith.mulf %52, %52 : vector<16x32xf32>
    %cst_24 = arith.constant dense<0.000000e+00> : vector<16xf32>
    %54 = vector.multi_reduction <add>, %53, %cst_24 [1] : vector<16x32xf32> to vector<16xf32>
    %55 = vector.shape_cast %54 : vector<16xf32> to vector<16x1xf32>
    %cst_25 = arith.constant 3.200000e+01 : f32
    %56 = vector.broadcast %cst_25 : f32 to vector<16x1xf32>
    %57 = arith.divf %55, %56 : vector<16x1xf32>
    %58 = vector.broadcast %50 : vector<16x1xf32> to vector<16x32xf32>
    %59 = arith.subf %46, %58 : vector<16x32xf32>
    %cst_26 = arith.constant 9.99999974E-6 : f32
    %60 = vector.broadcast %cst_26 : f32 to vector<16x1xf32>
    %61 = arith.addf %57, %60 : vector<16x1xf32>
    %62 = math.rsqrt %61 : vector<16x1xf32>
    %63 = vector.broadcast %62 : vector<16x1xf32> to vector<16x32xf32>
    %64 = arith.mulf %59, %63 : vector<16x32xf32>
    %65 = vector.extract_strided_slice %4 {offsets = [0, 96], sizes = [32, 32], strides = [1, 1]} : vector<32x384xf32> to vector<32x32xf32>
    %cst_27 = arith.constant dense<0.000000e+00> : vector<16x32xf32>
    %66 = tpu.matmul %64, %65, %cst_27 {dimension_numbers = #tpu.dot_dimension_numbers<[1], [0], [0], [1], [0, 0, 1, 1], [], []>} : vector<16x32xf32>, vector<32x32xf32>, vector<16x32xf32> -> vector<16x32xf32>
    %c0_28 = arith.constant 0 : index
    %c0_29 = arith.constant 0 : index
    %67 = vector.load %arg7[%c0_28, %c0_29] : memref<32x64xf32, #tpu.memory_space<vmem>>, vector<32x64xf32>
    %cst_30 = arith.constant dense<0.000000e+00> : vector<32x64xf32>
    %68 = tpu.matmul %2, %67, %cst_30 {dimension_numbers = #tpu.dot_dimension_numbers<[1], [0], [0], [1], [0, 0, 1, 1], [], []>} : vector<32x32xf32>, vector<32x64xf32>, vector<32x64xf32> -> vector<32x64xf32>
    %69 = vector.extract_strided_slice %68 {offsets = [0, 0], sizes = [32, 32], strides = [1, 1]} : vector<32x64xf32> to vector<32x32xf32>
    %70 = vector.extract_strided_slice %68 {offsets = [0, 32], sizes = [32, 32], strides = [1, 1]} : vector<32x64xf32> to vector<32x32xf32>
    %71 = tpu.transpose %69, [1, 0] : vector<32x32xf32> -> vector<32x32xf32>
    %cst_31 = arith.constant dense<0.000000e+00> : vector<16x32xf32>
    %72 = tpu.matmul %66, %71, %cst_31 {dimension_numbers = #tpu.dot_dimension_numbers<[1], [0], [0], [1], [0, 0, 1, 1], [], []>} : vector<16x32xf32>, vector<32x32xf32>, vector<16x32xf32> -> vector<16x32xf32>
    %c0_32 = arith.constant 0 : index
    %c0_33 = arith.constant 0 : index
    %73 = vector.load %arg5[%c0_32, %c0_33] : memref<16x32xf32, #tpu.memory_space<vmem>>, vector<16x32xf32>
    %74 = arith.addf %72, %73 : vector<16x32xf32>
    %cst_34 = arith.constant dense<0xFF800000> : vector<16xf32>
    %75 = vector.multi_reduction <maximumf>, %74, %cst_34 [1] : vector<16x32xf32> to vector<16xf32>
    %76 = vector.shape_cast %75 : vector<16xf32> to vector<16x1xf32>
    %77 = vector.broadcast %76 : vector<16x1xf32> to vector<16x32xf32>
    %78 = arith.subf %74, %77 : vector<16x32xf32>
    %79 = math.exp %78 : vector<16x32xf32>
    %cst_35 = arith.constant dense<0.000000e+00> : vector<16xf32>
    %80 = vector.multi_reduction <add>, %79, %cst_35 [1] : vector<16x32xf32> to vector<16xf32>
    %81 = vector.shape_cast %80 : vector<16xf32> to vector<16x1xf32>
    %82 = tpu.reciprocal %81 {approx = true} : vector<16x1xf32> -> vector<16x1xf32>
    %83 = vector.broadcast %82 : vector<16x1xf32> to vector<16x32xf32>
    %84 = arith.mulf %79, %83 : vector<16x32xf32>
    %cst_36 = arith.constant dense<0.000000e+00> : vector<16x32xf32>
    %85 = tpu.matmul %84, %70, %cst_36 {dimension_numbers = #tpu.dot_dimension_numbers<[1], [0], [0], [1], [0, 0, 1, 1], [], []>} : vector<16x32xf32>, vector<32x32xf32>, vector<16x32xf32> -> vector<16x32xf32>
    %86 = vector.extract_strided_slice %5 {offsets = [32, 0], sizes = [32, 32], strides = [1, 1]} : vector<192x32xf32> to vector<32x32xf32>
    %cst_37 = arith.constant dense<0.000000e+00> : vector<16x32xf32>
    %87 = tpu.matmul %85, %86, %cst_37 {dimension_numbers = #tpu.dot_dimension_numbers<[1], [0], [0], [1], [0, 0, 1, 1], [], []>} : vector<16x32xf32>, vector<32x32xf32>, vector<16x32xf32> -> vector<16x32xf32>
    %88 = arith.addf %46, %87 : vector<16x32xf32>
    %cst_38 = arith.constant dense<0.000000e+00> : vector<16xf32>
    %89 = vector.multi_reduction <add>, %88, %cst_38 [1] : vector<16x32xf32> to vector<16xf32>
    %90 = vector.shape_cast %89 : vector<16xf32> to vector<16x1xf32>
    %cst_39 = arith.constant 3.200000e+01 : f32
    %91 = vector.broadcast %cst_39 : f32 to vector<16x1xf32>
    %92 = arith.divf %90, %91 : vector<16x1xf32>
    %93 = vector.broadcast %92 : vector<16x1xf32> to vector<16x32xf32>
    %94 = arith.subf %88, %93 : vector<16x32xf32>
    %95 = arith.mulf %94, %94 : vector<16x32xf32>
    %cst_40 = arith.constant dense<0.000000e+00> : vector<16xf32>
    %96 = vector.multi_reduction <add>, %95, %cst_40 [1] : vector<16x32xf32> to vector<16xf32>
    %97 = vector.shape_cast %96 : vector<16xf32> to vector<16x1xf32>
    %cst_41 = arith.constant 3.200000e+01 : f32
    %98 = vector.broadcast %cst_41 : f32 to vector<16x1xf32>
    %99 = arith.divf %97, %98 : vector<16x1xf32>
    %100 = vector.broadcast %92 : vector<16x1xf32> to vector<16x32xf32>
    %101 = arith.subf %88, %100 : vector<16x32xf32>
    %cst_42 = arith.constant 9.99999974E-6 : f32
    %102 = vector.broadcast %cst_42 : f32 to vector<16x1xf32>
    %103 = arith.addf %99, %102 : vector<16x1xf32>
    %104 = math.rsqrt %103 : vector<16x1xf32>
    %105 = vector.broadcast %104 : vector<16x1xf32> to vector<16x32xf32>
    %106 = arith.mulf %101, %105 : vector<16x32xf32>
    %107 = vector.extract_strided_slice %4 {offsets = [0, 128], sizes = [32, 128], strides = [1, 1]} : vector<32x384xf32> to vector<32x128xf32>
    %cst_43 = arith.constant dense<0.000000e+00> : vector<16x128xf32>
    %108 = tpu.matmul %106, %107, %cst_43 {dimension_numbers = #tpu.dot_dimension_numbers<[1], [0], [0], [1], [0, 0, 1, 1], [], []>} : vector<16x32xf32>, vector<32x128xf32>, vector<16x128xf32> -> vector<16x128xf32>
    %cst_44 = arith.constant 0.000000e+00 : f32
    %109 = vector.broadcast %cst_44 : f32 to vector<16x128xf32>
    %110 = arith.maximumf %108, %109 : vector<16x128xf32>
    %111 = vector.extract_strided_slice %5 {offsets = [64, 0], sizes = [128, 32], strides = [1, 1]} : vector<192x32xf32> to vector<128x32xf32>
    %cst_45 = arith.constant dense<0.000000e+00> : vector<16x32xf32>
    %112 = tpu.matmul %110, %111, %cst_45 {dimension_numbers = #tpu.dot_dimension_numbers<[1], [0], [0], [1], [0, 0, 1, 1], [], []>} : vector<16x128xf32>, vector<128x32xf32>, vector<16x32xf32> -> vector<16x32xf32>
    %113 = arith.addf %88, %112 : vector<16x32xf32>
    %cst_46 = arith.constant dense<0.000000e+00> : vector<16xf32>
    %114 = vector.multi_reduction <add>, %113, %cst_46 [1] : vector<16x32xf32> to vector<16xf32>
    %115 = vector.shape_cast %114 : vector<16xf32> to vector<16x1xf32>
    %cst_47 = arith.constant 3.200000e+01 : f32
    %116 = vector.broadcast %cst_47 : f32 to vector<16x1xf32>
    %117 = arith.divf %115, %116 : vector<16x1xf32>
    %118 = vector.broadcast %117 : vector<16x1xf32> to vector<16x32xf32>
    %119 = arith.subf %113, %118 : vector<16x32xf32>
    %120 = arith.mulf %119, %119 : vector<16x32xf32>
    %cst_48 = arith.constant dense<0.000000e+00> : vector<16xf32>
    %121 = vector.multi_reduction <add>, %120, %cst_48 [1] : vector<16x32xf32> to vector<16xf32>
    %122 = vector.shape_cast %121 : vector<16xf32> to vector<16x1xf32>
    %cst_49 = arith.constant 3.200000e+01 : f32
    %123 = vector.broadcast %cst_49 : f32 to vector<16x1xf32>
    %124 = arith.divf %122, %123 : vector<16x1xf32>
    %125 = vector.broadcast %117 : vector<16x1xf32> to vector<16x32xf32>
    %126 = arith.subf %113, %125 : vector<16x32xf32>
    %cst_50 = arith.constant 9.99999974E-6 : f32
    %127 = vector.broadcast %cst_50 : f32 to vector<16x1xf32>
    %128 = arith.addf %124, %127 : vector<16x1xf32>
    %129 = math.rsqrt %128 : vector<16x1xf32>
    %130 = vector.broadcast %129 : vector<16x1xf32> to vector<16x32xf32>
    %131 = arith.mulf %126, %130 : vector<16x32xf32>
    %132 = vector.extract_strided_slice %4 {offsets = [0, 256], sizes = [32, 128], strides = [1, 1]} : vector<32x384xf32> to vector<32x128xf32>
    %cst_51 = arith.constant dense<0.000000e+00> : vector<16x128xf32>
    %133 = tpu.matmul %131, %132, %cst_51 {dimension_numbers = #tpu.dot_dimension_numbers<[1], [0], [0], [1], [0, 0, 1, 1], [], []>} : vector<16x32xf32>, vector<32x128xf32>, vector<16x128xf32> -> vector<16x128xf32>
    %c0_52 = arith.constant 0 : index
    %c0_53 = arith.constant 0 : index
    %134 = vector.load %arg9[%c0_52, %c0_53] : memref<16x128xf32, #tpu.memory_space<vmem>>, vector<16x128xf32>
    tpu.vector_store %arg9[%c0_52, %c0_53], %133 {strides = array<i32>} : memref<16x128xf32, #tpu.memory_space<vmem>>, vector<16x128xf32>,
    return
  }
  func.func @transform_0(%arg0: i32) -> (i32, i32) {
    %c0_i32 = arith.constant 0 : i32
    %c0_i32_0 = arith.constant 0 : i32
    %c0_i32_1 = arith.constant 0 : i32
    return %c0_i32, %c0_i32_0 : i32, i32
  }
  func.func @transform_1(%arg0: i32) -> (i32, i32) {
    %c0_i32 = arith.constant 0 : i32
    %c0_i32_0 = arith.constant 0 : i32
    %c0_i32_1 = arith.constant 0 : i32
    return %c0_i32, %c0_i32_0 : i32, i32
  }
  func.func @transform_2(%arg0: i32) -> (i32, i32) {
    %c0_i32 = arith.constant 0 : i32
    %c0_i32_0 = arith.constant 0 : i32
    %c0_i32_1 = arith.constant 0 : i32
    return %c0_i32, %c0_i32_0 : i32, i32
  }
  func.func @transform_3(%arg0: i32) -> (i32, i32) {
    %c0_i32 = arith.constant 0 : i32
    %c0_i32_0 = arith.constant 0 : i32
    %c0_i32_1 = arith.constant 0 : i32
    return %c0_i32, %c0_i32_0 : i32, i32
  }
  func.func @transform_4(%arg0: i32) -> (i32, i32) {
    %c0_i32 = arith.constant 0 : i32
    %c0_i32_0 = arith.constant 0 : i32
    %c0_i32_1 = arith.constant 0 : i32
    return %c0_i32, %c0_i32_0 : i32, i32
  }
  func.func @transform_5(%arg0: i32) -> (i32, i32) {
    %c0_i32 = arith.constant 0 : i32
    %c0_i32_0 = arith.constant 0 : i32
    %c0_i32_1 = arith.constant 0 : i32
    return %c0_i32, %c0_i32_0 : i32, i32
  }
  func.func @transform_6(%arg0: i32) -> (i32, i32) {
    %c0_i32 = arith.constant 0 : i32
    %c0_i32_0 = arith.constant 0 : i32
    %c0_i32_1 = arith.constant 0 : i32
    return %c0_i32, %c0_i32_0 : i32, i32
  }
  func.func @transform_7(%arg0: i32) -> (i32, i32) {
    %c0_i32 = arith.constant 0 : i32
    %c0_i32_0 = arith.constant 0 : i32
    %c0_i32_1 = arith.constant 0 : i32
    return %c0_i32, %c0_i32_0 : i32, i32
  }
  func.func @transform_8(%arg0: i32) -> (i32, i32) {
    %c0_i32 = arith.constant 0 : i32
    %c0_i32_0 = arith.constant 0 : i32
    %c0_i32_1 = arith.constant 0 : i32
    return %c0_i32, %c0_i32_0 : i32, i32
  }
}

</mosaic_0001>

<bundles_post_ra>
// kernel: tpu_custom_call.1
= control target key start
LH: loop header
LB: loop body
LE: loop exit
PB: predicated region body
PF: predicated region fallthrough
CT: control target
= control target key end

     0   :  { %vm173_vm0 = vcmask 261120   ;;  %s2341_s0 = inlined_call_operand.vmem [shape: f32[32,128], index: 0, kind: input, shape index: {}]   ;;  %s2342_s1 = inlined_call_operand.vmem [shape: f32[128,32], index: 1, kind: input, shape index: {}]   ;;  %s2343_s2 = inlined_call_operand.vmem [shape: f32[16,32], index: 2, kind: input, shape index: {}]   ;;  %s2344_s3 = inlined_call_operand.vmem [shape: f32[16,16], index: 3, kind: input, shape index: {}]   ;;  %s2345_s4 = inlined_call_operand.vmem [shape: f32[16,32], index: 4, kind: input, shape index: {}]   ;;  %s2346_s5 = inlined_call_operand.vmem [shape: f32[32,384], index: 5, kind: input, shape index: {}]   ;;  %s2347_s6 = inlined_call_operand.vmem [shape: f32[32,64], index: 6, kind: input, shape index: {}]   ;;  %s2348_s7 = inlined_call_operand.vmem [shape: f32[192,32], index: 7, kind: input, shape index: {}]   ;;  %s2349_s8 = inlined_call_operand.hbm [shape: f32[16,128], index: 8, kind: output, shape index: {}]  }
   0x1   :  { %v2011_v0 = vld [vmem:[%s2343_s2] sm:$0xff]  ;;  %v2016_v1 = vld [vmem:[%s2343_s2 + $0x8] sm:$0xff] }
   0x2   :  { %13 = vsyncpa [#allocation3], 0  ;;  %v174_v2 = vsel %vm173_vm0, %v2011_v0, 0.0  ;;  %v177_v3 = vsel %vm173_vm0, %v2016_v1, 0.0  ;;  %v2029_v14 = vld [vmem:[%s2346_s5] sm:$0xff]  ;;  %v2034_v15 = vld [vmem:[%s2346_s5 + $0x18] sm:$0xff] }
   0x3   :  { %175 = vadd.xlane.f32.xlu0 %v174_v2  ;;  %v2039_v16 = vld [vmem:[%s2346_s5 + $0x30] sm:$0xff]  ;;  %v1881_v17 = vpack.i.bf16 %v2034_v15, %v2029_v14  ;;  %v1747_v18 = vpack.c.bf16 %v2034_v15, %v2029_v14  ;;  %v2048_v19 = vld [vmem:[%s2346_s5 + $0x48] sm:$0xff]  ;;  %s1957_s16 = smov 96   ;;  %vm2058_vm1 = vmpackc.low %vm173_vm0, %vm173_vm0  ;;  %vm373_vm2 = vcmask 130048  }
   0x4   :  { %v1751_v20 = vpack.c.bf16 %v2048_v19, %v2039_v16  ;;  %v282_v39 = vld [vmem:[%s2344_s3] sm:$0xff]  ;;  %v283_v41 = vld [vmem:[%s2344_s3 + $0x8] sm:$0xff]  ;;  %s1958_s3 = smov 64  }
   0x5   :  { %1748 = vmatprep.subr.bf16.mxu1 %v1747_v18  ;;  %v149_v60 = vld [vmem:[%s2348_s7] sm:$0xff]  ;;  %v150_v61 = vld [vmem:[%s2348_s7 + $0x8] sm:$0xff] }
   0x6   :  { %1750 = vmatpush3.bf16.msra.mxu1 %v1747_v18  ;;  %v35_v18 = vld [vmem:[%s2342_s1 + $0x8] sm:$0xff] }
   0x7   :  { %178 = vadd.xlane.f32.xlu0 %v177_v3  ;;  %1752 = vmatprep.subr.bf16.mxu1 %v1751_v20  ;;  %v1765_v3 = vpack.c.bf16 %v150_v61, %v149_v60 }
   0xa   :  { %1754 = vmatpush3.bf16.msra.mxu1 %v1751_v20  ;;  %v36_v20 = vld [vmem:[%s2342_s1 + $0x10] sm:$0xff] }
  0x90   :  { %v176_v4 = vpop.xlane.xlu0 %175 }
  0x91   :  { %v181_v5 = vmul.f32 0.03125, %v176_v4 }
  0x93   :  { %v183_v6 = vsub.f32 %v2011_v0, %v181_v5  ;;  %v151_v5 = vld [vmem:[%s2348_s7 + $0x10] sm:$0xff] }
  0x94   :  { %v179_v7 = vpop.xlane.xlu0 %178 }
  0x95   :  { %v182_v8 = vmul.f32 0.03125, %v179_v7  ;;  %v185_v9 = vmul.f32 %v183_v6, %v183_v6 }
  0x97   :  { %v184_v10 = vsub.f32 %v2016_v1, %v182_v8  ;;  %v187_v11 = vsel %vm173_vm0, %v185_v9, 0.0 }
  0x98   :  { %188 = vadd.xlane.f32.xlu1 %v187_v11 }
  0x99   :  { %v186_v12 = vmul.f32 %v184_v10, %v184_v10 }
  0x9b   :  { %v190_v13 = vsel %vm173_vm0, %v186_v12, 0.0 }
  0x9c   :  { %191 = vadd.xlane.f32.xlu1 %v190_v13  ;;  %v34_v13 = vld [vmem:[%s2342_s1] sm:$0xff] }
 0x125   :  { %v189_v21 = vpop.xlane.xlu1 %188 }
 0x126   :  { %v193_v22 = vmul.f32 0.03125, %v189_v21  ;;  %v1715_v21 = vpack.c.bf16 %v35_v18, %v34_v13  ;;  %v690_v18 = vld [vmem:[%s2347_s6 + $0x8] sm:$0xff] }
 0x128   :  { %v195_v23 = vadd.f32 1e-05, %v193_v22  ;;  %v37_v22 = vld [vmem:[%s2342_s1 + $0x18] sm:$0xff]  ;;  %1716 = vmatprep.subr.bf16.mxu0 %v1715_v21 }
 0x129   :  { %v192_v24 = vpop.xlane.xlu1 %191  ;;  %1718 = vmatpush3.bf16.msra.mxu0 %v1715_v21 }
 0x12a   :  { %1901 = vrsqrt.f32 %v195_v23  ;;  %v194_v25 = vmul.f32 0.03125, %v192_v24  ;;  %v1719_v23 = vpack.c.bf16 %v37_v22, %v36_v20  ;;  %v38_v24 = vld [vmem:[%s2342_s1 + $0x20] sm:$0xff]  ;;  %v691_v22 = vld [vmem:[%s2347_s6 + $0x10] sm:$0xff] }
 0x12c   :  { %v196_v26 = vadd.f32 1e-05, %v194_v25  ;;  %v39_v25 = vld [vmem:[%s2342_s1 + $0x28] sm:$0xff]  ;;  %1720 = vmatprep.subr.bf16.mxu0 %v1719_v23 }
 0x12d   :  { %1722 = vmatpush3.bf16.msra.mxu0 %v1719_v23  ;;  %v692_v23 = vld [vmem:[%s2347_s6 + $0x18] sm:$0xff] }
 0x12e   :  { %1903 = vrsqrt.f32 %v196_v26  ;;  %v1723_v26 = vpack.c.bf16 %v39_v25, %v38_v24 }
 0x130   :  { %1724 = vmatprep.subr.bf16.mxu0 %v1723_v26 }
 0x131   :  { %1726 = vmatpush3.bf16.msra.mxu0 %v1723_v26 }
 0x134   :  { %v1902_v27 = vpop.eup %1901 }
 0x135   :  { %v199_v28 = vmul.f32 %v1902_v27, %v183_v6  ;;  %v152_v6 = vld [vmem:[%s2348_s7 + $0x18] sm:$0xff]  ;;  %v30_v27 = vld [vmem:[%s2341_s0] sm:$0xff] }
 0x136   :  { %1558 = vmatprep.mubr.f32.mxu0 %v30_v27  ;;  %v1785_v27 = vpack.c.bf16 %v692_v23, %v691_v22 }
 0x137   :  { %1572 = vmatprep.mubr.msk.f32.mxu1 %vm173_vm0, %v199_v28  ;;  %v40_v28 = vld [vmem:[%s2342_s1 + $0x30] sm:$0xff] }
 0x138   :  { %v1904_v29 = vpop.eup %1903 }
 0x139   :  { %v200_v30 = vmul.f32 %v1904_v29, %v184_v10  ;;  %v1769_v10 = vpack.c.bf16 %v152_v6, %v151_v5  ;;  %v41_v29 = vld [vmem:[%s2342_s1 + $0x38] sm:$0xff] }
 0x13b   :  { %1573 = vmatmul.mubr.msk.f32.vlgmr.msra.gmra.mrb[0].mxu1 %vm173_vm0, %v200_v30  ;;  %v1727_v30 = vpack.c.bf16 %v41_v29, %v40_v28 }
 0x13d   :  { %1728 = vmatprep.subr.bf16.mxu0 %v1727_v30 }
 0x13e   :  { %1730 = vmatpush3.bf16.msra.mxu0 %v1727_v30 }
 0x20e   :  { %v1574_v31 = vpop.f32.mrb[0].mxu1 }
 0x20f   :  { %v273_v32 = vpop.f32.mrb[1].mxu1 }
 0x210   :  { %v1876_v33 = vpack.i.bf16 %v1574_v31, %v273_v32  ;;  %1579 = vmatprep.mubr.msk.f32.mxu1 %vm173_vm0, %v273_v32  ;;  %v43_v32 = vld [vmem:[%s2342_s1 + $0x48] sm:$0xff] }
 0x212   :  { %1872 = vrot.lane.b32.xlu0 %v1876_v33, %s1957_s16 }
 0x284   :  { %v1873_v34 = vpop.permute.xlu0 %1872 }
 0x285   :  { %v1875_v35 = vunpack.i.h.bf16 %v1873_v34  ;;  %v1874_v36 = vunpack.i.l.bf16 %v1873_v34  ;;  %v44_v34 = vld [vmem:[%s2342_s1 + $0x50] sm:$0xff] }
 0x287   :  { %v1755_v38 = vpack.c.bf16 %v1875_v35, %v1874_v36  ;;  %v45_v35 = vld [vmem:[%s2342_s1 + $0x58] sm:$0xff] }
 0x288   :  { %v1735_v36 = vpack.c.bf16 %v45_v35, %v44_v34 }
 0x289   :  { %1757 = vmatprep.subr.msk.bf16.mxu1 %vm2058_vm1, %v1755_v38 }
 0x28a   :  { %1760 = vmatpush3.bf16.xpose.msk.msra.mxu1 %vm2058_vm1, %v1755_v38  ;;  %v46_v38 = vld [vmem:[%s2342_s1 + $0x60] sm:$0xff] }
 0x291   :  { %1580 = vmatmul.mubr.msk.f32.vlgmr.msra.gmra.mrb[2].mxu1 %vm173_vm0, %v1574_v31  ;;  %v42_v31 = vld [vmem:[%s2342_s1 + $0x40] sm:$0xff] }
 0x364   :  { %v1581_v40 = vpop.f32.mrb[2].mxu1 }
 0x365   :  { %v364_v42 = vpop.f32.mrb[3].mxu1  ;;  %v370_v44 = vadd.f32 %v1581_v40, %v283_v41  ;;  %v48_v41 = vld [vmem:[%s2342_s1 + $0x70] sm:$0xff] }
 0x366   :  { %v365_v43 = vadd.f32 %v364_v42, %v282_v39  ;;  %v47_v39 = vld [vmem:[%s2342_s1 + $0x68] sm:$0xff]  ;;  %v49_v42 = vld [vmem:[%s2342_s1 + $0x78] sm:$0xff] }
 0x367   :  { %v377_v46 = vsel %vm373_vm2, %v370_v44, -inf  ;;  %v1739_v40 = vpack.c.bf16 %v47_v39, %v46_v38  ;;  %v791_v39 = vld [vmem:[%s2345_s4 + $0x8] sm:$0xff] }
 0x368   :  { %v374_v45 = vsel %vm373_vm2, %v365_v43, -inf }
 0x369   :  { %375 = vmax.xlane.f32.xlu1 %v374_v45  ;;  %v32_v45 = vld [vmem:[%s2341_s0 + $0x10] sm:$0xff] }
 0x36d   :  { %378 = vmax.xlane.f32.xlu1 %v377_v46  ;;  %v33_v46 = vld [vmem:[%s2341_s0 + $0x18] sm:$0xff] }
 0x3f6   :  { %v376_v47 = vpop.xlane.xlu1 %375 }
 0x3f7   :  { %v380_v48 = vsub.f32 %v365_v43, %v376_v47  ;;  %v1743_v43 = vpack.c.bf16 %v49_v42, %v48_v41 }
 0x3f9   :  { %v382_v51 = vmul.f32 1.442695, %v380_v48 }
 0x3fa   :  { %v379_v49 = vpop.xlane.xlu1 %378 }
 0x3fb   :  { %v381_v50 = vsub.f32 %v370_v44, %v379_v49  ;;  %v31_v44 = vld [vmem:[%s2341_s0 + $0x8] sm:$0xff]  ;;  %s1959_s0 = smov 32  }
 0x3fd   :  { %v384_v52 = vmul.f32 1.442695, %v381_v50 }
 0x3ff   :  { %1905 = vpow2.f32 %v384_v52 }
 0x400   :  { %1907 = vpow2.f32 %v382_v51 }
 0x409   :  { %v1906_v53 = vpop.eup %1905 }
 0x40a   :  { %v389_v54 = vsel %vm373_vm2, %v1906_v53, 0.0  ;;  %v1908_v55 = vpop.eup %1907 }
 0x40b   :  { %390 = vadd.xlane.f32.xlu1 %v389_v54  ;;  %v386_v56 = vsel %vm373_vm2, %v1908_v55, 0.0 }
 0x40f   :  { %387 = vadd.xlane.f32.xlu1 %v386_v56 }
 0x420   :  { %1877 = vrot.lane.b32.xlu1 %v1876_v33, %s1958_s3  ;;  %v1731_v33 = vpack.c.bf16 %v43_v32, %v42_v31 }
 0x422   :  { %1732 = vmatprep.subr.bf16.mxu0 %v1731_v33 }
 0x423   :  { %1734 = vmatpush3.bf16.msra.mxu0 %v1731_v33 }
 0x424   :  { %1736 = vmatprep.subr.bf16.mxu0 %v1735_v36 }
 0x427   :  { %1738 = vmatpush3.bf16.msra.mxu0 %v1735_v36 }
 0x428   :  { %1740 = vmatprep.subr.bf16.mxu0 %v1739_v40 }
 0x42b   :  { %1742 = vmatpush3.bf16.msra.mxu0 %v1739_v40  ;;  %v790_v40 = vld [vmem:[%s2345_s4] sm:$0xff] }
 0x42c   :  { %1744 = vmatprep.subr.bf16.mxu0 %v1743_v43 }
 0x42f   :  { %1746 = vmatpush3.bf16.msra.mxu0 %v1743_v43 }
 0x432   :  { %1559 = vmatmul.mubr.f32.vlgmr.msra.gmra.mrb[0].mxu0 %v31_v44 }
 0x433   :  { %1561 = vmatprep.mubr.f32.mxu0 %v32_v45 }
 0x436   :  { %1562 = vmatmul.mubr.f32.gmra.mrb[2].mxu0 %v33_v46 }
 0x498   :  { %v391_v57 = vpop.xlane.xlu1 %390 }
 0x499   :  { %1909 = vrcp.f32 %v391_v57 }
 0x49c   :  { %v388_v58 = vpop.xlane.xlu1 %387 }
 0x49d   :  { %1911 = vrcp.f32 %v388_v58 }
 0x4a0   :  { %v1878_v59 = vpop.permute.xlu1 %1877 }
 0x4a1   :  { %v1880_v62 = vunpack.i.h.bf16 %v1878_v59  ;;  %v1879_v63 = vunpack.i.l.bf16 %v1878_v59 }
 0x4a3   :  { %v1761_v2 = vpack.c.bf16 %v1880_v62, %v1879_v63  ;;  %v1910_v4 = vpop.eup %1909 }
 0x4a4   :  { %v395_v9 = vmul.f32 %v1910_v4, %v1906_v53  ;;  %v1886_v53 = vpack.i.bf16 %v2048_v19, %v2039_v16 }
 0x4a5   :  { %1762 = vmatprep.subr.bf16.mxu1 %v1761_v2 }
 0x4a6   :  { %1764 = vmatpush3.bf16.msra.mxu1 %v1761_v2 }
 0x4a7   :  { %v1912_v7 = vpop.eup %1911  ;;  %1766 = vmatprep.subr.bf16.mxu1 %v1765_v3 }
 0x4a8   :  { %v394_v8 = vmul.f32 %v1912_v7, %v1908_v55 }
 0x4aa   :  { %1586 = vmatprep.mubr.msk.f32.mxu1 %vm373_vm2, %v394_v8 }
 0x4ab   :  { %1587 = vmatmul.mubr.msk.f32.vlgmr.msra.gmra.mrb[4].mxu1 %vm373_vm2, %v395_v9 }
 0x4ac   :  { %1768 = vmatpush3.bf16.msra.mxu1 %v1765_v3 }
 0x4ad   :  { %1770 = vmatprep.subr.bf16.mxu1 %v1769_v10 }
 0x4b0   :  { %1772 = vmatpush3.bf16.msra.mxu1 %v1769_v10 }
 0x505   :  { %v1560_v16 = vpop.f32.mrb[0].mxu0 }
 0x506   :  { %v116_v19 = vpop.f32.mrb[1].mxu0 }
 0x509   :  { %v1563_v62 = vpop.f32.mrb[2].mxu0 }
 0x50a   :  { %v126_v63 = vpop.f32.mrb[3].mxu0 }
 0x57e   :  { %v1588_v11 = vpop.f32.mrb[4].mxu1 }
 0x57f   :  { %v474_v12 = vpop.f32.mrb[5].mxu1 }
 0x580   :  { %1597 = vmatprep.mubr.msk.f32.mxu1 %vm173_vm0, %v474_v12 }
 0x581   :  { %1598 = vmatmul.mubr.msk.f32.vlgmr.msra.gmra.mrb[6].mxu1 %vm173_vm0, %v1588_v11 }
 0x654   :  { %v1599_v47 = vpop.f32.mrb[6].mxu1 }
 0x655   :  { %v2154_v48 = vadd.f32 %v1599_v47, %v2016_v1  ;;  %v555_v49 = vpop.f32.mrb[7].mxu1 }
 0x656   :  { %v2157_v50 = vadd.f32 %v555_v49, %v2011_v0 }
 0x657   :  { %v569_v51 = vsel %vm173_vm0, %v2154_v48, 0.0 }
 0x658   :  { %570 = vadd.xlane.f32.xlu1 %v569_v51  ;;  %v566_v52 = vsel %vm173_vm0, %v2157_v50, 0.0 }
 0x659   :  { %567 = vadd.xlane.f32.xlu0 %v566_v52 }
 0x669   :  { %1887 = vrot.lane.b32.xlu1 %v1886_v53, %s1959_s0 }
 0x6e5   :  { %v571_v54 = vpop.xlane.xlu1 %570 }
 0x6e6   :  { %v573_v1 = vmul.f32 0.03125, %v571_v54  ;;  %v568_v55 = vpop.xlane.xlu0 %567 }
 0x6e7   :  { %v572_v56 = vmul.f32 0.03125, %v568_v55 }
 0x6e8   :  { %v575_v0 = vsub.f32 %v2154_v48, %v573_v1 }
 0x6e9   :  { %v574_v57 = vsub.f32 %v2157_v50, %v572_v56  ;;  %v1888_v6 = vpop.permute.xlu1 %1887 }
 0x6ea   :  { %v577_v58 = vmul.f32 %v575_v0, %v575_v0  ;;  %v1890_v9 = vunpack.i.h.bf16 %v1888_v6  ;;  %v1889_v10 = vunpack.i.l.bf16 %v1888_v6 }
 0x6eb   :  { %v576_v60 = vmul.f32 %v574_v57, %v574_v57 }
 0x6ec   :  { %v581_v59 = vsel %vm173_vm0, %v577_v58, 0.0  ;;  %v1777_v15 = vpack.c.bf16 %v1890_v9, %v1889_v10  ;;  %v156_v9 = vld [vmem:[%s2348_s7 + $0x38] sm:$0xff] }
 0x6ed   :  { %582 = vadd.xlane.f32.xlu0 %v581_v59  ;;  %v578_v61 = vsel %vm173_vm0, %v576_v60, 0.0 }
 0x6f1   :  { %579 = vadd.xlane.f32.xlu0 %v578_v61 }
 0x707   :  { %1882 = vrot.lane.b32.xlu0 %v1881_v17, %s1959_s0  ;;  %v689_v17 = vld [vmem:[%s2347_s6] sm:$0xff] }
 0x708   :  { %v1781_v20 = vpack.c.bf16 %v690_v18, %v689_v17 }
 0x77a   :  { %v583_v2 = vpop.xlane.xlu0 %582 }
 0x77b   :  { %v585_v3 = vmul.f32 0.03125, %v583_v2  ;;  %v154_v2 = vld [vmem:[%s2348_s7 + $0x28] sm:$0xff] }
 0x77d   :  { %v587_v4 = vadd.f32 1e-05, %v585_v3 }
 0x77e   :  { %v580_v5 = vpop.xlane.xlu0 %579 }
 0x77f   :  { %v584_v7 = vmul.f32 0.03125, %v580_v5  ;;  %1913 = vrsqrt.f32 %v587_v4 }
 0x781   :  { %v586_v8 = vadd.f32 1e-05, %v584_v7 }
 0x782   :  { %v1883_v11 = vpop.permute.xlu0 %1882 }
 0x783   :  { %1915 = vrsqrt.f32 %v586_v8  ;;  %v1885_v12 = vunpack.i.h.bf16 %v1883_v11  ;;  %v1884_v13 = vunpack.i.l.bf16 %v1883_v11  ;;  %v155_v8 = vld [vmem:[%s2348_s7 + $0x30] sm:$0xff] }
 0x784   :  { %v1813_v11 = vpack.c.bf16 %v156_v9, %v155_v8 }
 0x785   :  { %v1773_v14 = vpack.c.bf16 %v1885_v12, %v1884_v13 }
 0x787   :  { %1774 = vmatprep.subr.bf16.mxu1 %v1773_v14 }
 0x788   :  { %1776 = vmatpush3.bf16.msra.mxu1 %v1773_v14 }
 0x789   :  { %1778 = vmatprep.subr.bf16.mxu1 %v1777_v15  ;;  %v1914_v21 = vpop.eup %1913 }
 0x78a   :  { %v591_v26 = vmul.f32 %v1914_v21, %v575_v0 }
 0x78c   :  { %1780 = vmatpush3.bf16.msra.mxu1 %v1777_v15 }
 0x78d   :  { %v1916_v24 = vpop.eup %1915  ;;  %1782 = vmatprep.subr.bf16.mxu1 %v1781_v20 }
 0x78e   :  { %v590_v25 = vmul.f32 %v1916_v24, %v574_v57 }
 0x790   :  { %1608 = vmatprep.mubr.msk.f32.mxu1 %vm173_vm0, %v590_v25 }
 0x791   :  { %1609 = vmatmul.mubr.msk.f32.vlgmr.msra.gmra.mrb[8].mxu1 %vm173_vm0, %v591_v26 }
 0x792   :  { %1784 = vmatpush3.bf16.msra.mxu1 %v1781_v20  ;;  %1619 = vmatprep.mubr.msk.f32.mxu1 %vm173_vm0, %v116_v19 }
 0x793   :  { %1786 = vmatprep.subr.bf16.mxu1 %v1785_v27 }
 0x796   :  { %1788 = vmatpush3.bf16.msra.mxu1 %v1785_v27 }
 0x799   :  { %1620 = vmatmul.mubr.msk.f32.vlgmr.msra.gmra.mrb[10].mxu1 %vm173_vm0, %v1560_v16 }
 0x79a   :  { %1622 = vmatprep.mubr.msk.f32.mxu1 %vm173_vm0, %v126_v63  ;;  %v153_v63 = vld [vmem:[%s2348_s7 + $0x20] sm:$0xff] }
 0x79b   :  { %v1809_v5 = vpack.c.bf16 %v154_v2, %v153_v63 }
 0x79d   :  { %1623 = vmatmul.mubr.msk.f32.gmra.mrb[12].mxu1 %vm173_vm0, %v1563_v62 }
 0x864   :  { %v1610_v28 = vpop.f32.mrb[8].mxu1 }
 0x865   :  { %v680_v29 = vpop.f32.mrb[9].mxu1 }
 0x866   :  { %1633 = vmatprep.mubr.msk.f32.mxu1 %vm173_vm0, %v680_v29 }
 0x86c   :  { %v1621_v30 = vpop.f32.mrb[10].mxu1 }
 0x86d   :  { %v771_v31 = vpop.f32.mrb[11].mxu1 }
 0x86e   :  { %v1891_v32 = vpack.i.bf16 %v1621_v30, %v771_v31  ;;  %v1789_v33 = vpack.c.bf16 %v1621_v30, %v771_v31  ;;  %v138_v30 = vld [vmem:[%s2346_s5 + $0x8] sm:$0xff]  ;;  %v141_v31 = vld [vmem:[%s2346_s5 + $0x20] sm:$0xff] }
 0x870   :  { %1791 = vmatprep.subr.msk.bf16.mxu1 %vm2058_vm1, %v1789_v33  ;;  %v1624_v34 = vpop.f32.mrb[12].mxu1 }
 0x871   :  { %1794 = vmatpush3.bf16.xpose.msk.msra.mxu1 %vm2058_vm1, %v1789_v33  ;;  %v781_v35 = vpop.f32.mrb[13].mxu1  ;;  %v1817_v33 = vpack.c.bf16 %v141_v31, %v138_v30  ;;  %v148_v30 = vld [vmem:[%s2346_s5 + $0x58] sm:$0xff] }
 0x872   :  { %v1896_v36 = vpack.i.bf16 %v1624_v34, %v781_v35  ;;  %v1795_v38 = vpack.c.bf16 %v1624_v34, %v781_v35  ;;  %v147_v34 = vld [vmem:[%s2346_s5 + $0x50] sm:$0xff] }
 0x874   :  { %1797 = vmatprep.subr.msk.bf16.mxu1 %vm2058_vm1, %v1795_v38 }
 0x879   :  { %1800 = vmatpush3.bf16.xpose.msk.msra.mxu1 %vm2058_vm1, %v1795_v38  ;;  %v158_v38 = vld [vmem:[%s2348_s7 + $0x48] sm:$0xff] }
 0x87a   :  { %1818 = vmatprep.subr.bf16.mxu1 %v1817_v33 }
 0x880   :  { %1634 = vmatmul.mubr.msk.f32.vlgmr.msra.gmra.mrb[14].mxu1 %vm173_vm0, %v1610_v28 }
 0x881   :  { %1820 = vmatpush3.bf16.msra.mxu1 %v1817_v33 }
 0x953   :  { %v1635_v41 = vpop.f32.mrb[14].mxu1 }
 0x954   :  { %v882_v42 = vadd.f32 %v1635_v41, %v791_v39  ;;  %v876_v43 = vpop.f32.mrb[15].mxu1  ;;  %v159_v39 = vld [vmem:[%s2348_s7 + $0x50] sm:$0xff]  ;;  %v160_v41 = vld [vmem:[%s2348_s7 + $0x58] sm:$0xff] }
 0x955   :  { %v877_v44 = vadd.f32 %v876_v43, %v790_v40  ;;  %v161_v43 = vld [vmem:[%s2348_s7 + $0x60] sm:$0xff] }
 0x956   :  { %v888_v45 = vsel %vm173_vm0, %v882_v42, -inf }
 0x957   :  { %889 = vmax.xlane.f32.xlu1 %v888_v45  ;;  %v885_v37 = vsel %vm173_vm0, %v877_v44, -inf }
 0x958   :  { %886 = vmax.xlane.f32.xlu0 %v885_v37  ;;  %v163_v37 = vld [vmem:[%s2348_s7 + $0x70] sm:$0xff] }
 0x968   :  { %1897 = vrot.lane.b32.xlu1 %v1896_v36, %s1957_s16  ;;  %v157_v36 = vld [vmem:[%s2348_s7 + $0x40] sm:$0xff] }
 0x969   :  { %v1825_v40 = vpack.c.bf16 %v158_v38, %v157_v36 }
 0x9e4   :  { %v890_v46 = vpop.xlane.xlu1 %889 }
 0x9e5   :  { %v892_v47 = vsub.f32 %v882_v42, %v890_v46  ;;  %v887_v49 = vpop.xlane.xlu0 %886  ;;  %v1829_v42 = vpack.c.bf16 %v160_v41, %v159_v39  ;;  %v164_v46 = vld [vmem:[%s2348_s7 + $0x78] sm:$0xff] }
 0x9e6   :  { %v891_v51 = vsub.f32 %v877_v44, %v887_v49  ;;  %v162_v44 = vld [vmem:[%s2348_s7 + $0x68] sm:$0xff]  ;;  %v165_v49 = vld [vmem:[%s2348_s7 + $0x80] sm:$0xff] }
 0x9e7   :  { %v895_v52 = vmul.f32 1.442695, %v892_v47  ;;  %v1833_v45 = vpack.c.bf16 %v162_v44, %v161_v43  ;;  %v1837_v47 = vpack.c.bf16 %v164_v46, %v163_v37 }
 0x9e8   :  { %v893_v53 = vmul.f32 1.442695, %v891_v51  ;;  %v1898_v58 = vpop.permute.xlu1 %1897  ;;  %v166_v51 = vld [vmem:[%s2348_s7 + $0x88] sm:$0xff] }
 0x9e9   :  { %1917 = vpow2.f32 %v895_v52  ;;  %v1900_v60 = vunpack.i.h.bf16 %v1898_v58  ;;  %v1899_v61 = vunpack.i.l.bf16 %v1898_v58  ;;  %v1841_v52 = vpack.c.bf16 %v166_v51, %v165_v49 }
 0x9ea   :  { %1919 = vpow2.f32 %v893_v53  ;;  %v167_v53 = vld [vmem:[%s2348_s7 + $0x90] sm:$0xff] }
 0x9eb   :  { %v1805_v3 = vpack.c.bf16 %v1900_v60, %v1899_v61 }
 0x9f3   :  { %v1918_v54 = vpop.eup %1917 }
 0x9f4   :  { %v900_v1 = vsel %vm173_vm0, %v1918_v54, 0.0  ;;  %v1920_v55 = vpop.eup %1919 }
 0x9f5   :  { %901 = vadd.xlane.f32.xlu0 %v900_v1  ;;  %v897_v56 = vsel %vm173_vm0, %v1920_v55, 0.0 }
 0x9f9   :  { %898 = vadd.xlane.f32.xlu0 %v897_v56  ;;  %v170_v56 = vld [vmem:[%s2348_s7 + $0xa8] sm:$0xff] }
 0xa0f   :  { %1892 = vrot.lane.b32.xlu0 %v1891_v32, %s1957_s16  ;;  %v144_v32 = vld [vmem:[%s2346_s5 + $0x38] sm:$0xff] }
 0xa10   :  { %v1821_v35 = vpack.c.bf16 %v147_v34, %v144_v32 }
 0xa12   :  { %1822 = vmatprep.subr.bf16.mxu1 %v1821_v35 }
 0xa13   :  { %1824 = vmatpush3.bf16.msra.mxu1 %v1821_v35 }
 0xa82   :  { %v902_v0 = vpop.xlane.xlu0 %901 }
 0xa86   :  { %v899_v57 = vpop.xlane.xlu0 %898 }
 0xa87   :  { %1921 = vrcp.f32 %v899_v57 }
 0xa88   :  { %1923 = vrcp.f32 %v902_v0 }
 0xa8a   :  { %v1893_v59 = vpop.permute.xlu0 %1892 }
 0xa8b   :  { %v1895_v16 = vunpack.i.h.bf16 %v1893_v59  ;;  %v1894_v19 = vunpack.i.l.bf16 %v1893_v59 }
 0xa8d   :  { %v1801_v62 = vpack.c.bf16 %v1895_v16, %v1894_v19 }
 0xa8f   :  { %1802 = vmatprep.subr.bf16.mxu0 %v1801_v62 }
 0xa90   :  { %1804 = vmatpush3.bf16.msra.mxu0 %v1801_v62 }
 0xa91   :  { %v1922_v4 = vpop.eup %1921  ;;  %1806 = vmatprep.subr.bf16.mxu0 %v1805_v3 }
 0xa92   :  { %v1924_v6 = vpop.eup %1923  ;;  %v905_v7 = vmul.f32 %v1922_v4, %v1920_v55  ;;  %v169_v55 = vld [vmem:[%s2348_s7 + $0xa0] sm:$0xff]  ;;  %v172_v4 = vld [vmem:[%s2348_s7 + $0xb8] sm:$0xff] }
 0xa93   :  { %v906_v10 = vmul.f32 %v1924_v6, %v1918_v54  ;;  %v168_v54 = vld [vmem:[%s2348_s7 + $0x98] sm:$0xff]  ;;  %v1849_v0 = vpack.c.bf16 %v170_v56, %v169_v55 }
 0xa94   :  { %1808 = vmatpush3.bf16.msra.mxu0 %v1805_v3  ;;  %1644 = vmatprep.mubr.msk.f32.mxu0 %vm173_vm0, %v905_v7  ;;  %v1845_v1 = vpack.c.bf16 %v168_v54, %v167_v53  ;;  %v171_v3 = vld [vmem:[%s2348_s7 + $0xb0] sm:$0xff] }
 0xa95   :  { %1810 = vmatprep.subr.bf16.mxu0 %v1809_v5 }
 0xa97   :  { %1645 = vmatmul.mubr.msk.f32.vlgmr.msra.gmra.mrb[4].mxu0 %vm173_vm0, %v906_v10 }
 0xa98   :  { %1812 = vmatpush3.bf16.msra.mxu0 %v1809_v5  ;;  %v1853_v5 = vpack.c.bf16 %v172_v4, %v171_v3 }
 0xa99   :  { %1814 = vmatprep.subr.bf16.mxu0 %v1813_v11 }
 0xa9c   :  { %1816 = vmatpush3.bf16.msra.mxu0 %v1813_v11 }
 0xa9d   :  { %1826 = vmatprep.subr.bf16.mxu0 %v1825_v40 }
 0xb6a   :  { %v1646_v12 = vpop.f32.mrb[4].mxu0 }
 0xb6b   :  { %v991_v13 = vpop.f32.mrb[5].mxu0 }
 0xb6c   :  { %1655 = vmatprep.mubr.msk.f32.mxu0 %vm173_vm0, %v991_v13 }
 0xb6d   :  { %1656 = vmatmul.mubr.msk.f32.vlgmr.msra.gmra.mrb[6].mxu0 %vm173_vm0, %v1646_v12 }
 0xb6e   :  { %1828 = vmatpush3.bf16.msra.mxu0 %v1825_v40 }
 0xb6f   :  { %1830 = vmatprep.subr.bf16.mxu0 %v1829_v42 }
 0xb72   :  { %1832 = vmatpush3.bf16.msra.mxu0 %v1829_v42 }
 0xb73   :  { %1834 = vmatprep.subr.bf16.mxu0 %v1833_v45 }
 0xb76   :  { %1836 = vmatpush3.bf16.msra.mxu0 %v1833_v45 }
 0xb77   :  { %1838 = vmatprep.subr.bf16.mxu0 %v1837_v47 }
 0xb7a   :  { %1840 = vmatpush3.bf16.msra.mxu0 %v1837_v47 }
 0xb7b   :  { %1842 = vmatprep.subr.bf16.mxu0 %v1841_v52 }
 0xb7e   :  { %1844 = vmatpush3.bf16.msra.mxu0 %v1841_v52 }
 0xb7f   :  { %1846 = vmatprep.subr.bf16.mxu0 %v1845_v1 }
 0xb82   :  { %1848 = vmatpush3.bf16.msra.mxu0 %v1845_v1 }
 0xb83   :  { %1850 = vmatprep.subr.bf16.mxu0 %v1849_v0 }
 0xb86   :  { %1852 = vmatpush3.bf16.msra.mxu0 %v1849_v0 }
 0xb87   :  { %1854 = vmatprep.subr.bf16.mxu0 %v1853_v5 }
 0xb8a   :  { %1856 = vmatpush3.bf16.msra.mxu0 %v1853_v5 }
 0xc40   :  { %v1657_v14 = vpop.f32.mrb[6].mxu0 }
 0xc41   :  { %v2229_v15 = vadd.f32 %v1657_v14, %v2154_v48  ;;  %v1072_v17 = vpop.f32.mrb[7].mxu0 }
 0xc42   :  { %v2232_v18 = vadd.f32 %v1072_v17, %v2157_v50 }
 0xc43   :  { %v1086_v20 = vsel %vm173_vm0, %v2229_v15, 0.0 }
 0xc44   :  { %1087 = vadd.xlane.f32.xlu0 %v1086_v20  ;;  %v1083_v21 = vsel %vm173_vm0, %v2232_v18, 0.0 }
 0xc45   :  { %1084 = vadd.xlane.f32.xlu1 %v1083_v21 }
 0xcd1   :  { %v1088_v22 = vpop.xlane.xlu0 %1087 }
 0xcd2   :  { %v1090_v23 = vmul.f32 0.03125, %v1088_v22  ;;  %v1085_v24 = vpop.xlane.xlu1 %1084 }
 0xcd3   :  { %v1089_v25 = vmul.f32 0.03125, %v1085_v24 }
 0xcd4   :  { %v2239_v26 = vsub.f32 %v2229_v15, %v1090_v23 }
 0xcd5   :  { %v1091_v48 = vsub.f32 %v2232_v18, %v1089_v25 }
 0xcd6   :  { %v1094_v50 = vmul.f32 %v2239_v26, %v2239_v26 }
 0xcd7   :  { %v1093_v27 = vmul.f32 %v1091_v48, %v1091_v48 }
 0xcd8   :  { %v1098_v28 = vsel %vm173_vm0, %v1094_v50, 0.0 }
 0xcd9   :  { %1099 = vadd.xlane.f32.xlu1 %v1098_v28  ;;  %v1095_v29 = vsel %vm173_vm0, %v1093_v27, 0.0  ;;  %v142_v27 = vld [vmem:[%s2346_s5 + $0x28] sm:$0xff] }
 0xcda   :  { %1096 = vadd.xlane.f32.xlu0 %v1095_v29  ;;  %v145_v29 = vld [vmem:[%s2346_s5 + $0x40] sm:$0xff] }
 0xcdb   :  { %v1861_v31 = vpack.c.bf16 %v148_v30, %v145_v29 }
 0xd66   :  { %v1100_v57 = vpop.xlane.xlu1 %1099 }
 0xd67   :  { %v1102_v58 = vmul.f32 0.03125, %v1100_v57  ;;  %v1097_v59 = vpop.xlane.xlu0 %1096 }
 0xd68   :  { %v1101_v60 = vmul.f32 0.03125, %v1097_v59 }
 0xd69   :  { %v1104_v61 = vadd.f32 1e-05, %v1102_v58 }
 0xd6a   :  { %v1103_v16 = vadd.f32 1e-05, %v1101_v60 }
 0xd6b   :  { %1925 = vrsqrt.f32 %v1104_v61 }
 0xd6c   :  { %1927 = vrsqrt.f32 %v1103_v16 }
 0xd75   :  { %v1926_v19 = vpop.eup %1925 }
 0xd76   :  { %v1928_v62 = vpop.eup %1927  ;;  %v1108_v2 = vmul.f32 %v1926_v19, %v2239_v26 }
 0xd77   :  { %v1107_v63 = vmul.f32 %v1928_v62, %v1091_v48 }
 0xd79   :  { %1666 = vmatprep.mubr.msk.f32.mxu1 %vm173_vm0, %v1107_v63 }
 0xd7a   :  { %1667 = vmatmul.mubr.msk.f32.vlgmr.msra.gmra.mrb[16].mxu1 %vm173_vm0, %v1108_v2 }
 0xe4d   :  { %v1668_v6 = vpop.f32.mrb[16].mxu1 }
 0xe4e   :  { %v1181_v7 = vpop.f32.mrb[17].mxu1  ;;  %v1191_v9 = vmax.f32 %v1668_v6, 0.0 }
 0xe4f   :  { %v1190_v8 = vmax.f32 %v1181_v7, 0.0 }
 0xe51   :  { %1701 = vmatprep.mubr.f32.mxu0 %v1190_v8 }
 0xe52   :  { %1702 = vmatmul.mubr.f32.vlgmr.msra.gmra.mrb[8].mxu0 %v1191_v9 }
 0xf25   :  { %v1703_v10 = vpop.f32.mrb[8].mxu0 }
 0xf26   :  { %v1268_v11 = vadd.f32 %v1703_v10, %v2229_v15  ;;  %v1258_v12 = vpop.f32.mrb[9].mxu0 }
 0xf27   :  { %v1267_v13 = vadd.f32 %v1258_v12, %v2232_v18  ;;  %v139_v18 = vld [vmem:[%s2346_s5 + $0x10] sm:$0xff]  ;;  %s1960_s5 = smov [#allocation2]  }
 0xf28   :  { %v1272_v14 = vsel %vm173_vm0, %v1268_v11, 0.0  ;;  %v1857_v28 = vpack.c.bf16 %v142_v27, %v139_v18  ;;  %s1383_s9 = sshll.u32 %s1960_s5, 4  ;;  %s1384_s9 = int_to_ptr.vmem [resolvable:$true] %s1383_s9 }
 0xf29   :  { %1273 = vadd.xlane.f32.xlu1 %v1272_v14  ;;  %v1269_v17 = vsel %vm173_vm0, %v1267_v13, 0.0  ;;  %s1933_s4 = scalar_lea.vmem %s1384_s9, 256  ;;  %p1938_p1 = scmp.lt.s32.totalorder %s1384_s9, %s1384_s9 }
 0xf2a   :  { %1270 = vadd.xlane.f32.xlu0 %v1269_v17  ;;  %1858 = vmatprep.subr.bf16.mxu1 %v1857_v28  ;;  %p1934_p0 = scmp.ne.s32.totalorder %s1384_s9, %s1933_s4  ;;  %p1939_p2 = scmp.lt.s32.totalorder %s1933_s4, %s1933_s4 }
 0xf2b   :  { %1860 = vmatpush3.bf16.msra.mxu1 %v1857_v28 }
 0xf2c   :  { %1862 = vmatprep.subr.bf16.mxu1 %v1861_v31  ;;  %p1940_p3 = por %p1939_p2, %p1938_p1 }
 0xf2e   :  { %p1941_p4 = pnand %p1940_p3, %p1934_p0 }
 0xf2f   :  { %1864 = vmatpush3.bf16.msra.mxu1 %v1861_v31 }
 0xfb6   :  { %v1274_v20 = vpop.xlane.xlu1 %1273 }
 0xfb7   :  { %v1276_v21 = vmul.f32 0.03125, %v1274_v20  ;;  %v1271_v22 = vpop.xlane.xlu0 %1270 }
 0xfb8   :  { %v1275_v23 = vmul.f32 0.03125, %v1271_v22 }
 0xfb9   :  { %v1278_v24 = vsub.f32 %v1268_v11, %v1276_v21 }
 0xfba   :  { %v1277_v25 = vsub.f32 %v1267_v13, %v1275_v23 }
 0xfbb   :  { %v1280_v26 = vmul.f32 %v1278_v24, %v1278_v24 }
 0xfbc   :  { %v1279_v48 = vmul.f32 %v1277_v25, %v1277_v25 }
 0xfbd   :  { %v1284_v50 = vsel %vm173_vm0, %v1280_v26, 0.0 }
 0xfbe   :  { %1285 = vadd.xlane.f32.xlu1 %v1284_v50  ;;  %v1281_v15 = vsel %vm173_vm0, %v1279_v48, 0.0 }
 0xfbf   :  { %1282 = vadd.xlane.f32.xlu0 %v1281_v15 }
0x104b   :  { %v1286_v32 = vpop.xlane.xlu1 %1285 }
0x104c   :  { %v1288_v33 = vmul.f32 0.03125, %v1286_v32  ;;  %v1283_v34 = vpop.xlane.xlu0 %1282 }
0x104d   :  { %v1287_v35 = vmul.f32 0.03125, %v1283_v34 }
0x104e   :  { %v1290_v36 = vadd.f32 1e-05, %v1288_v33 }
0x104f   :  { %v1289_v38 = vadd.f32 1e-05, %v1287_v35 }
0x1050   :  { %1929 = vrsqrt.f32 %v1290_v36 }
0x1051   :  { %1931 = vrsqrt.f32 %v1289_v38 }
0x105a   :  { %v1930_v39 = vpop.eup %1929 }
0x105b   :  { %v1932_v40 = vpop.eup %1931  ;;  %v1294_v42 = vmul.f32 %v1930_v39, %v1278_v24 }
0x105c   :  { %v1293_v41 = vmul.f32 %v1932_v40, %v1277_v25 }
0x105e   :  { %1712 = vmatprep.mubr.msk.f32.mxu1 %vm173_vm0, %v1293_v41 }
0x105f   :  { %1713 = vmatmul.mubr.msk.f32.vlgmr.msra.gmra.mrb[18].mxu1 %vm173_vm0, %v1294_v42 }
0x1132   :  { %v1714_v43 = vpop.f32.mrb[18].mxu1 }
0x1133   :  { %1377 = vst [vmem:[#allocation2 + $0x8] sm:$0xff] %v1714_v43  ;;  %v1367_v44 = vpop.f32.mrb[19].mxu1 }
0x1134   :  { %1376 = vst [vmem:[#allocation2] sm:$0xff] %v1367_v44 }
0x1135   :  { %1944 = shalt.err (!%p1941_p4)
}
0x1136   :  { %s1945_s12 = scalar_lea.hbm %s2349_s8, 256 }
0x1137   :  { %p1946_p5 = scmp.ne.s32.totalorder %s2349_s8, %s1945_s12  ;;  %p1949_p6 = scmp.lt.u32.totalorder %s1945_s12, %s2349_s8 }
0x1139   :  { %p1951_p7 = pnand %p1949_p6, %p1946_p5 }
0x113b   :  { %1954 = shalt.err (!%p1951_p7)
}
0x113c   :  { %s1961_s17 = smov 128   ;;  %s1962_s18 = smov 8  }
0x113d   :  { %1389 = dma.vmem_to_hbm [thread:$0]  %s1384_s9, 256, %s2349_s8, [#allocation3], %s1961_s17, %s1961_s17, %s1962_s18  }
0x113e   :  { %1955 = dma.done.wait [#allocation3], 256  }
0x113f   :  { %1956 = vsyncadd [#allocation3], 4294967040 }
0x1140   :  { %1393 = vsyncpa [#allocation3], 1 }

</bundles_post_ra>
